<compile_context>
chip_gen: v7x
topology: tpu7x:2x2x1
jax: 0.10.0
libtpu: 0.0.40
codegen_flags: <defaults>
</compile_context>

<pallas_src>
import functools

import jax
import jax.numpy as jnp
from jax.experimental import pallas as pl
from jax.experimental.pallas import tpu as pltpu


def _rope_kernel(q_ref, k_ref, tab_ref, oq_ref, ok_ref, *, d, half):
    """out = x*cos + rotate_half(x)*sin, rotate_half realized as XLU roll(s).

    Blocks:
      q/k/oq/ok : (TBH, TR, L)  lane-dense slabs (L == 128 when head_dim < 128)
      tab       : (2, TR, L)    float32; [0]=cos, [1]=sin with rotate_half sign folded
    Rotary D-segments are contiguous along the lane axis, so rotate_half is a
    static lane roll; when L > D a second roll + select handles the segments.
    """
    cos = tab_ref[0]                         # (TR, L) f32
    sin = tab_ref[1]                         # (TR, L) f32, sign-folded
    L = cos.shape[-1]
    lane_axis = 2                            # minormost axis of the (TBH, TR, L) block

    shift_hi = half % L                      # source for lanes with (lane % d) >= half
    shift_lo = (half - d) % L                # source for lanes with (lane % d) <  half
    if shift_hi != shift_lo:
        lane = jax.lax.broadcasted_iota(jnp.int32, (1, 1, L), 2)
        hi = (lane % d) >= half              # broadcasts over (TBH, TR, L)

    def rope(x_ref, o_ref):
        x = x_ref[...].astype(jnp.float32)   # compute in f32, cast on store
        r_hi = pltpu.roll(x, shift=shift_hi, axis=lane_axis)
        if shift_hi == shift_lo:             # L == D: a single roll is exact
            rot = r_hi
        else:                                # packed segments: segmented rotate
            r_lo = pltpu.roll(x, shift=shift_lo, axis=lane_axis)
            rot = jnp.where(hi, r_hi, r_lo)
        o_ref[...] = (x * cos + rot * sin).astype(o_ref.dtype)

    rope(q_ref, oq_ref)
    rope(k_ref, ok_ref)


def _build_tables(seq_len, dim, max_pos):
    """Stacked [cos; sign-folded sin] table, float32, shape (2, seq_len, dim)."""
    half = dim // 2
    scales = 1.0 / (max_pos ** (jnp.arange(0, dim, 2, dtype=jnp.float32) / dim))
    freqs = jnp.outer(jnp.arange(seq_len, dtype=jnp.float32), scales)   # (S, D/2)
    emb = jnp.concatenate([freqs, freqs], axis=-1)                      # (S, D)
    sign = jnp.concatenate([jnp.full((half,), -1.0, jnp.float32),
                            jnp.ones((half,), jnp.float32)])
    return jnp.stack([jnp.cos(emb), jnp.sin(emb) * sign], axis=0)       # (2, S, D)


def _largest_divisor(n, cap, multiple_of=1):
    for d in range(min(n, cap), 0, -1):
        if n % d == 0 and d % multiple_of == 0:
            return d
    return None


def _hw_params():
    """(target q-block bytes, physical VMEM bytes) — generation aware."""
    try:
        vmem = int(pltpu.get_tpu_info().vmem_capacity_bytes)
    except Exception:
        return (1 << 20), (64 << 20)          # conservative default (v7x-sized VMEM)
    if vmem <= (64 << 20):                    # v7x-class: ~3.2 TB/s HBM, 64 MiB VMEM/TC
        return (2 << 20), vmem
    return (1 << 20), vmem                    # v5e / v6e: ~1 MiB ≈ 85% of HBM roofline


@functools.partial(jax.jit, static_argnames=("max_pos", "in_place"))
def rotary_embedding(q, k, *, max_pos: int = 10000, in_place: bool = False):
    """Pallas TPU implementation of RotaryEmbedding.forward(q, k).

    q, k: [B, H, S, D].  Returns (rope(q), rope(k)) in the input dtypes.
    in_place=True aliases q/k into the outputs (only useful with donated inputs
    that are never re-read).
    """
    assert q.shape == k.shape, "q and k must share [B, H, S, D]"
    B, H, S, D = q.shape
    assert D % 2 == 0, "rotary dim must be even"
    half = D // 2
    BH = B * H

    # Lane-dense packing: fold whole D-segments onto 128 lanes when D < 128.
    # (S, D) -> (R, L) is a pure reshape of contiguous memory (zero HBM traffic).
    if D < 128 and 128 % D == 0 and (S * D) % 128 == 0:
        L = 128
    else:
        # TODO(synk): pad S (or fold BH into the packed row axis) so D<128 heads
        # with awkward S / D=96-style heads still get unmasked 128-lane stores.
        L = D
    R = (S * D) // L

    qf = q.reshape(BH, R, L)
    kf = k.reshape(BH, R, L)
    tab = _build_tables(S, D, max_pos).reshape(2, R, L)

    itemsize = max(jnp.dtype(q.dtype).itemsize, jnp.dtype(k.dtype).itemsize)
    target_bytes, vmem_cap = _hw_params()
    sub_mult = max(8, 32 // itemsize)          # native sublane tile: 8/f32, 16/bf16, 32/i8
    row_bytes = L * itemsize

    # --- tile selection ----------------------------------------------------
    max_rows = max(1, target_bytes // row_bytes)
    tr = (_largest_divisor(R, min(R, max_rows), multiple_of=sub_mult)
          or _largest_divisor(R, min(R, max_rows), multiple_of=8)
          or R)                                # full extent is always layout-legal
    max_bh = max(1, target_bytes // (tr * row_bytes))
    tbh = _largest_divisor(BH, max_bh) or 1

    # Guarantee enough grid steps for DMA/compute pipelining and for both v7x
    # TensorCores, as long as a split block would still be reasonably large.
    MIN_STEPS, MIN_BLOCK = 8, 128 << 10

    def _steps(tb, t_r):
        return (BH // tb) * (R // t_r)

    def _shrink(n, cur, mult=1):
        for dd in range(cur - 1, 0, -1):
            if n % dd == 0 and dd % mult == 0:
                return dd
        return None

    while _steps(tbh, tr) < MIN_STEPS and tbh * tr * row_bytes >= 2 * MIN_BLOCK:
        new_tbh = _shrink(BH, tbh) if tbh > 1 else None
        if new_tbh is not None and new_tbh * tr * row_bytes >= MIN_BLOCK:
            tbh = new_tbh
            continue
        new_tr = _shrink(R, tr, sub_mult) if tr > sub_mult else None
        if new_tr is not None and tbh * new_tr * row_bytes >= MIN_BLOCK:
            tr = new_tr
            continue
        break

    # Grid: seq-row blocks OUTER, BH slabs INNER -> cos/sin block index constant
    # along the inner loop, so the table is fetched once per r-block, not per step.
    grid = (R // tr, BH // tbh)
    x_spec = pl.BlockSpec((tbh, tr, L), lambda r, i: (i, r, 0))
    t_spec = pl.BlockSpec((2, tr, L), lambda r, i: (0, r, 0))

    # VMEM budget: q/k/oq/ok double-buffered + table double-buffered + f32 temps,
    # capped with headroom below this generation's physical VMEM.
    blk_io = tbh * tr * L * itemsize
    blk_f32 = tbh * tr * L * 4
    tab_blk = 2 * tr * L * 4
    vmem_need = 8 * blk_io + 2 * tab_blk + 4 * blk_f32
    vmem_limit = int(min(vmem_cap - (8 << 20), max(32 << 20, 3 * vmem_need)))

    kernel = functools.partial(_rope_kernel, d=D, half=half)
    oq, ok = pl.pallas_call(
        kernel,
        out_shape=(
            jax.ShapeDtypeStruct((BH, R, L), q.dtype),
            jax.ShapeDtypeStruct((BH, R, L), k.dtype),
        ),
        grid_spec=pltpu.PrefetchScalarGridSpec(
            num_scalar_prefetch=0,
            grid=grid,
            in_specs=[x_spec, x_spec, t_spec],
            out_specs=(x_spec, x_spec),
        ),
        compiler_params=pltpu.CompilerParams(
            dimension_semantics=("parallel", "parallel"),
            vmem_limit_bytes=vmem_limit,
        ),
        input_output_aliases={0: 0, 1: 1} if in_place else {},
    )(qf, kf, tab)

    return oq.reshape(B, H, S, D), ok.reshape(B, H, S, D)


def _rope_reference(q, k, max_pos=10000):
    """Plain-JAX reference (standard rotate_half formulation, f32 math)."""
    B, H, S, D = q.shape
    scales = 1.0 / (max_pos ** (jnp.arange(0, D, 2, dtype=jnp.float32) / D))
    freqs = jnp.outer(jnp.arange(S, dtype=jnp.float32), scales)
    emb = jnp.concatenate([freqs, freqs], axis=-1)
    cos = jnp.cos(emb)[None, None]
    sin = jnp.sin(emb)[None, None]

    def rotate_half(x):
        x1, x2 = jnp.split(x, 2, axis=-1)
        return jnp.concatenate([-x2, x1], axis=-1)

    def apply(x):
        xf = x.astype(jnp.float32)
        return (xf * cos + rotate_half(xf) * sin).astype(x.dtype)

    return apply(q), apply(k)


if __name__ == "__main__":
    key = jax.random.PRNGKey(0)
    kq, kk = jax.random.split(key)

    # Small shape from the spec (dim=32 rotary) — lane-packing path, f32.
    B, H, S, D = 2, 4, 8, 32
    q = jax.random.normal(kq, (B, H, S, D), dtype=jnp.float32)
    k = jax.random.normal(kk, (B, H, S, D), dtype=jnp.float32)
    oq, ok = rotary_embedding(q, k, max_pos=10000)
    jax.block_until_ready((oq, ok))
    rq, rk = _rope_reference(q, k)
    assert jnp.allclose(oq, rq, atol=1e-5, rtol=1e-5)
    assert jnp.allclose(ok, rk, atol=1e-5, rtol=1e-5)

    # Packed-lane path with bf16 I/O and odd-ish sequence length (D=64, S=10).
    B1, H1, S1, D1 = 1, 2, 10, 64
    q1 = jax.random.normal(kq, (B1, H1, S1, D1), dtype=jnp.bfloat16)
    k1 = jax.random.normal(kk, (B1, H1, S1, D1), dtype=jnp.bfloat16)
    oq1, ok1 = rotary_embedding(q1, k1, max_pos=10000)
    jax.block_until_ready((oq1, ok1))
    rq1, rk1 = _rope_reference(q1, k1)
    assert jnp.allclose(oq1.astype(jnp.float32), rq1.astype(jnp.float32),
                        atol=5e-2, rtol=5e-2)
    assert jnp.allclose(ok1.astype(jnp.float32), rk1.astype(jnp.float32),
                        atol=5e-2, rtol=5e-2)

    # Production-like shape: 128-lane head_dim, longer sequence, bf16 I/O.
    B2, H2, S2, D2 = 2, 4, 256, 128
    q2 = jax.random.normal(kq, (B2, H2, S2, D2), dtype=jnp.bfloat16)
    k2 = jax.random.normal(kk, (B2, H2, S2, D2), dtype=jnp.bfloat16)
    oq2, ok2 = rotary_embedding(q2, k2, max_pos=10000)
    jax.block_until_ready((oq2, ok2))
    rq2, rk2 = _rope_reference(q2, k2)
    assert jnp.allclose(oq2.astype(jnp.float32), rq2.astype(jnp.float32),
                        atol=5e-2, rtol=5e-2)
    assert jnp.allclose(ok2.astype(jnp.float32), rk2.astype(jnp.float32),
                        atol=5e-2, rtol=5e-2)

    print("KERNEL_OK")
</pallas_src>

<mosaic_0001>
module attributes {stable_mosaic.version = 11 : i64} {
  func.func @_rope_kernel(%arg0: i32, %arg1: i32, %arg2: memref<8x2x128xf32, #tpu.memory_space<vmem>>, %arg3: memref<8x2x128xf32, #tpu.memory_space<vmem>>, %arg4: memref<2x2x128xf32, #tpu.memory_space<vmem>>, %arg5: memref<8x2x128xf32, #tpu.memory_space<vmem>>, %arg6: memref<8x2x128xf32, #tpu.memory_space<vmem>>) attributes {dimension_semantics = [#tpu.dimension_semantics<parallel>, #tpu.dimension_semantics<parallel>], iteration_bounds = array<i64: 1, 1>, scalar_prefetch = 0 : i64, scratch_operands = 0 : i64, tpu.core_type = #tpu.core_type<tc>, window_params = [{transform_indices = @transform_0, window_bounds = array<i64: 8, 2, 128>}, {transform_indices = @transform_1, window_bounds = array<i64: 8, 2, 128>}, {transform_indices = @transform_2, window_bounds = array<i64: 2, 2, 128>}, {transform_indices = @transform_3, window_bounds = array<i64: 8, 2, 128>}, {transform_indices = @transform_4, window_bounds = array<i64: 8, 2, 128>}]} {
    %c0 = arith.constant 0 : index
    %c0_0 = arith.constant 0 : index
    %c0_1 = arith.constant 0 : index
    %0 = vector.load %arg4[%c0, %c0_0, %c0_1] : memref<2x2x128xf32, #tpu.memory_space<vmem>>, vector<1x2x128xf32>
    %1 = vector.shape_cast %0 : vector<1x2x128xf32> to vector<2x128xf32>
    %c1 = arith.constant 1 : index
    %c0_2 = arith.constant 0 : index
    %c0_3 = arith.constant 0 : index
    %2 = vector.load %arg4[%c1, %c0_2, %c0_3] : memref<2x2x128xf32, #tpu.memory_space<vmem>>, vector<1x2x128xf32>
    %3 = vector.shape_cast %2 : vector<1x2x128xf32> to vector<2x128xf32>
    %4 = tpu.iota {dimensions = array<i32: 2>} : vector<1x1x128xi32>
    %c32_i32 = arith.constant 32 : i32
    %c0_i32 = arith.constant 0 : i32
    %5 = arith.cmpi eq, %c32_i32, %c0_i32 : i32
    %c1_i32 = arith.constant 1 : i32
    %6 = arith.select %5, %c1_i32, %c32_i32 : i32
    %7 = vector.broadcast %6 : i32 to vector<1x1x128xi32>
    %8 = arith.remsi %4, %7 : vector<1x1x128xi32>
    %c0_i32_4 = arith.constant 0 : i32
    %9 = vector.broadcast %c0_i32_4 : i32 to vector<1x1x128xi32>
    %10 = arith.cmpi ne, %8, %9 : vector<1x1x128xi32>
    %c0_i32_5 = arith.constant 0 : i32
    %11 = vector.broadcast %c0_i32_5 : i32 to vector<1x1x128xi32>
    %12 = arith.cmpi slt, %8, %11 : vector<1x1x128xi32>
    %c0_i32_6 = arith.constant 0 : i32
    %13 = arith.cmpi slt, %6, %c0_i32_6 : i32
    %14 = vector.broadcast %13 : i1 to vector<1x1x128xi1>
    %15 = vector.broadcast %14 : vector<1x1x128xi1> to vector<1x1x128xi1>
    %16 = arith.xori %12, %15 : vector<1x1x128xi1>
    %17 = arith.andi %16, %10 : vector<1x1x128xi1>
    %18 = vector.broadcast %6 : i32 to vector<1x1x128xi32>
    %19 = arith.addi %8, %18 : vector<1x1x128xi32>
    %20 = arith.select %17, %19, %8 : vector<1x1x128xi1>, vector<1x1x128xi32>
    %c16_i32 = arith.constant 16 : i32
    %21 = vector.broadcast %c16_i32 : i32 to vector<1x1x128xi32>
    %22 = arith.cmpi sge, %20, %21 : vector<1x1x128xi32>
    %c0_7 = arith.constant 0 : index
    %c0_8 = arith.constant 0 : index
    %c0_9 = arith.constant 0 : index
    %23 = vector.load %arg2[%c0_7, %c0_8, %c0_9] : memref<8x2x128xf32, #tpu.memory_space<vmem>>, vector<8x2x128xf32>
    %c16_i32_10 = arith.constant 16 : i32
    %24 = tpu.dynamic_rotate %23 by %c16_i32_10 dim 2 : vector<8x2x128xf32>, i32 -> vector<8x2x128xf32>
    %c112_i32 = arith.constant 112 : i32
    %25 = tpu.dynamic_rotate %23 by %c112_i32 dim 2 : vector<8x2x128xf32>, i32 -> vector<8x2x128xf32>
    %26 = vector.shape_cast %22 : vector<1x1x128xi1> to vector<1x1x128xi1>
    %27 = vector.broadcast %26 : vector<1x1x128xi1> to vector<8x2x128xi1>
    %28 = arith.select %27, %24, %25 : vector<8x2x128xi1>, vector<8x2x128xf32>
    %29 = vector.shape_cast %1 : vector<2x128xf32> to vector<1x2x128xf32>
    %30 = vector.broadcast %29 : vector<1x2x128xf32> to vector<8x2x128xf32>
    %31 = arith.mulf %23, %30 : vector<8x2x128xf32>
    %32 = vector.shape_cast %3 : vector<2x128xf32> to vector<1x2x128xf32>
    %33 = vector.broadcast %32 : vector<1x2x128xf32> to vector<8x2x128xf32>
    %34 = arith.mulf %28, %33 : vector<8x2x128xf32>
    %35 = arith.addf %31, %34 : vector<8x2x128xf32>
    %c0_11 = arith.constant 0 : index
    %c0_12 = arith.constant 0 : index
    %c0_13 = arith.constant 0 : index
    %36 = vector.load %arg5[%c0_11, %c0_12, %c0_13] : memref<8x2x128xf32, #tpu.memory_space<vmem>>, vector<8x2x128xf32>
    tpu.vector_store %arg5[%c0_11, %c0_12, %c0_13], %35 {strides = array<i32>} : memref<8x2x128xf32, #tpu.memory_space<vmem>>, vector<8x2x128xf32>,
    %c0_14 = arith.constant 0 : index
    %c0_15 = arith.constant 0 : index
    %c0_16 = arith.constant 0 : index
    %37 = vector.load %arg3[%c0_14, %c0_15, %c0_16] : memref<8x2x128xf32, #tpu.memory_space<vmem>>, vector<8x2x128xf32>
    %c16_i32_17 = arith.constant 16 : i32
    %38 = tpu.dynamic_rotate %37 by %c16_i32_17 dim 2 : vector<8x2x128xf32>, i32 -> vector<8x2x128xf32>
    %c112_i32_18 = arith.constant 112 : i32
    %39 = tpu.dynamic_rotate %37 by %c112_i32_18 dim 2 : vector<8x2x128xf32>, i32 -> vector<8x2x128xf32>
    %40 = vector.shape_cast %22 : vector<1x1x128xi1> to vector<1x1x128xi1>
    %41 = vector.broadcast %40 : vector<1x1x128xi1> to vector<8x2x128xi1>
    %42 = arith.select %41, %38, %39 : vector<8x2x128xi1>, vector<8x2x128xf32>
    %43 = vector.shape_cast %1 : vector<2x128xf32> to vector<1x2x128xf32>
    %44 = vector.broadcast %43 : vector<1x2x128xf32> to vector<8x2x128xf32>
    %45 = arith.mulf %37, %44 : vector<8x2x128xf32>
    %46 = vector.shape_cast %3 : vector<2x128xf32> to vector<1x2x128xf32>
    %47 = vector.broadcast %46 : vector<1x2x128xf32> to vector<8x2x128xf32>
    %48 = arith.mulf %42, %47 : vector<8x2x128xf32>
    %49 = arith.addf %45, %48 : vector<8x2x128xf32>
    %c0_19 = arith.constant 0 : index
    %c0_20 = arith.constant 0 : index
    %c0_21 = arith.constant 0 : index
    %50 = vector.load %arg6[%c0_19, %c0_20, %c0_21] : memref<8x2x128xf32, #tpu.memory_space<vmem>>, vector<8x2x128xf32>
    tpu.vector_store %arg6[%c0_19, %c0_20, %c0_21], %49 {strides = array<i32>} : memref<8x2x128xf32, #tpu.memory_space<vmem>>, vector<8x2x128xf32>,
    return
  }
  func.func @transform_0(%arg0: i32, %arg1: i32) -> (i32, i32, i32) {
    %c0_i32 = arith.constant 0 : i32
    %c0_i32_0 = arith.constant 0 : i32
    return %arg1, %arg0, %c0_i32 : i32, i32, i32
  }
  func.func @transform_1(%arg0: i32, %arg1: i32) -> (i32, i32, i32) {
    %c0_i32 = arith.constant 0 : i32
    %c0_i32_0 = arith.constant 0 : i32
    return %arg1, %arg0, %c0_i32 : i32, i32, i32
  }
  func.func @transform_2(%arg0: i32, %arg1: i32) -> (i32, i32, i32) {
    %c0_i32 = arith.constant 0 : i32
    %c0_i32_0 = arith.constant 0 : i32
    %c0_i32_1 = arith.constant 0 : i32
    return %c0_i32, %arg0, %c0_i32_0 : i32, i32, i32
  }
  func.func @transform_3(%arg0: i32, %arg1: i32) -> (i32, i32, i32) {
    %c0_i32 = arith.constant 0 : i32
    %c0_i32_0 = arith.constant 0 : i32
    return %arg1, %arg0, %c0_i32 : i32, i32, i32
  }
  func.func @transform_4(%arg0: i32, %arg1: i32) -> (i32, i32, i32) {
    %c0_i32 = arith.constant 0 : i32
    %c0_i32_0 = arith.constant 0 : i32
    return %arg1, %arg0, %c0_i32 : i32, i32, i32
  }
}

</mosaic_0001>

<bundles_post_ra>
// kernel: rotary_embedding.1
= control target key start
LH: loop header
LB: loop body
LE: loop exit
PB: predicated region body
PF: predicated region fallthrough
CT: control target
= control target key end

     0   :  { %s207_s19 = smov 16   ;;  %s208_s6 = smov 112   ;;  %v19_v18 = vlaneseq  ;;  %s515_s0 = inlined_call_operand.vmem [shape: f32[8,2,128], index: 0, kind: input, shape index: {}]   ;;  %s516_s1 = inlined_call_operand.vmem [shape: f32[8,2,128], index: 1, kind: input, shape index: {}]   ;;  %s517_s2 = inlined_call_operand.vmem [shape: f32[2,2,128], index: 2, kind: input, shape index: {}]   ;;  %s518_s3 = inlined_call_operand.vmem [shape: f32[8,2,128], index: 3, kind: output, shape index: {0}]   ;;  %s519_s4 = inlined_call_operand.vmem [shape: f32[8,2,128], index: 4, kind: output, shape index: {1}]  }
   0x1   :  { %v237_v0 = vld [vmem:[%s515_s0 + $0x4] sm:$0x3]  ;;  %v242_v1 = vld [vmem:[%s515_s0] sm:$0x3]  ;;  %v251_v2 = vld [vmem:[%s515_s0 + $0x6] sm:$0x3] }
   0x2   :  { %46 = vrot.lane.b32.xlu1 %v237_v0, %s207_s19  ;;  %42 = vrot.lane.b32.xlu0 %v242_v1, %s207_s19  ;;  %v35_v3 = vld [vmem:[%s515_s0 + $0x2] sm:$0x3]  ;;  %v262_v4 = vld [vmem:[%s515_s0 + $0xa] sm:$0x3]  ;;  %v20_v21 = vand.u32 127, %v19_v18 }
   0x3   :  { %v267_v5 = vld [vmem:[%s515_s0 + $0x8] sm:$0x3]  ;;  %v276_v6 = vld [vmem:[%s515_s0 + $0xe] sm:$0x3]  ;;  %v281_v7 = vld [vmem:[%s515_s0 + $0xc] sm:$0x3] }
   0x4   :  { %v305_v8 = vld [vmem:[%s516_s1 + $0x2] sm:$0x3]  ;;  %v310_v9 = vld [vmem:[%s516_s1] sm:$0x3]  ;;  %v319_v10 = vld [vmem:[%s516_s1 + $0x6] sm:$0x3] }
   0x5   :  { %v324_v11 = vld [vmem:[%s516_s1 + $0x4] sm:$0x3]  ;;  %v333_v12 = vld [vmem:[%s516_s1 + $0xa] sm:$0x3]  ;;  %v338_v13 = vld [vmem:[%s516_s1 + $0x8] sm:$0x3] }
   0x6   :  { %48 = vrot.lane.b32.xlu1 %v251_v2, %s207_s19  ;;  %44 = vrot.lane.b32.xlu0 %v35_v3, %s207_s19  ;;  %v347_v14 = vld [vmem:[%s516_s1 + $0xe] sm:$0x3]  ;;  %v352_v15 = vld [vmem:[%s516_s1 + $0xc] sm:$0x3]  ;;  %v25_v24 = vand.u32 31, %v20_v21 }
   0x7   :  { %v377_v27 = vld [vmem:[%s517_s2] sm:$0x3]  ;;  %v386_v29 = vld [vmem:[%s517_s2 + $0x2] sm:$0x3] }
   0x8   :  { %vm379_vm0 = vcmp.ge.s32.totalorder %v25_v24, 16  ;;  %v84_v30 = vmul.f32 %v242_v1, %v377_v27  ;;  %v85_v31 = vmul.f32 %v35_v3, %v377_v27  ;;  %v86_v38 = vmul.f32 %v237_v0, %v377_v27 }
   0x9   :  { %v87_v39 = vmul.f32 %v251_v2, %v377_v27  ;;  %v89_v48 = vmul.f32 %v262_v4, %v377_v27  ;;  %v88_v49 = vmul.f32 %v267_v5, %v377_v27  ;;  %v91_v58 = vmul.f32 %v276_v6, %v377_v27 }
   0xa   :  { %52 = vrot.lane.b32.xlu1 %v262_v4, %s207_s19  ;;  %50 = vrot.lane.b32.xlu0 %v267_v5, %s207_s19  ;;  %v90_v59 = vmul.f32 %v281_v7, %v377_v27 }
   0xe   :  { %56 = vrot.lane.b32.xlu1 %v276_v6, %s207_s19  ;;  %54 = vrot.lane.b32.xlu0 %v281_v7, %s207_s19 }
  0x12   :  { %60 = vrot.lane.b32.xlu1 %v35_v3, %s208_s6  ;;  %58 = vrot.lane.b32.xlu0 %v242_v1, %s208_s6 }
  0x16   :  { %64 = vrot.lane.b32.xlu1 %v251_v2, %s208_s6  ;;  %62 = vrot.lane.b32.xlu0 %v237_v0, %s208_s6 }
  0x1a   :  { %68 = vrot.lane.b32.xlu1 %v262_v4, %s208_s6  ;;  %66 = vrot.lane.b32.xlu0 %v267_v5, %s208_s6 }
  0x1e   :  { %72 = vrot.lane.b32.xlu1 %v276_v6, %s208_s6  ;;  %70 = vrot.lane.b32.xlu0 %v281_v7, %s208_s6 }
  0x22   :  { %126 = vrot.lane.b32.xlu1 %v305_v8, %s207_s19  ;;  %124 = vrot.lane.b32.xlu0 %v310_v9, %s207_s19 }
  0x26   :  { %130 = vrot.lane.b32.xlu1 %v319_v10, %s207_s19  ;;  %128 = vrot.lane.b32.xlu0 %v324_v11, %s207_s19 }
  0x2a   :  { %134 = vrot.lane.b32.xlu1 %v333_v12, %s207_s19  ;;  %132 = vrot.lane.b32.xlu0 %v338_v13, %s207_s19 }
  0x2e   :  { %138 = vrot.lane.b32.xlu1 %v347_v14, %s207_s19  ;;  %136 = vrot.lane.b32.xlu0 %v352_v15, %s207_s19 }
  0x32   :  { %142 = vrot.lane.b32.xlu1 %v305_v8, %s208_s6  ;;  %140 = vrot.lane.b32.xlu0 %v310_v9, %s208_s6 }
  0x36   :  { %146 = vrot.lane.b32.xlu1 %v319_v10, %s208_s6  ;;  %144 = vrot.lane.b32.xlu0 %v324_v11, %s208_s6 }
  0x3a   :  { %150 = vrot.lane.b32.xlu1 %v333_v12, %s208_s6  ;;  %148 = vrot.lane.b32.xlu0 %v338_v13, %s208_s6 }
  0x3e   :  { %154 = vrot.lane.b32.xlu1 %v347_v14, %s208_s6  ;;  %152 = vrot.lane.b32.xlu0 %v352_v15, %s208_s6 }
  0x74   :  { %v47_v16 = vpop.permute.xlu1 %46  ;;  %v43_v17 = vpop.permute.xlu0 %42 }
  0x78   :  { %v49_v19 = vpop.permute.xlu1 %48  ;;  %v45_v20 = vpop.permute.xlu0 %44 }
  0x7c   :  { %v53_v22 = vpop.permute.xlu1 %52  ;;  %v51_v23 = vpop.permute.xlu0 %50 }
  0x80   :  { %v57_v25 = vpop.permute.xlu1 %56  ;;  %v55_v26 = vpop.permute.xlu0 %54 }
  0x84   :  { %v61_v32 = vpop.permute.xlu1 %60  ;;  %v59_v33 = vpop.permute.xlu0 %58 }
  0x85   :  { %v77_v34 = vsel %vm379_vm0, %v45_v20, %v61_v32  ;;  %v76_v35 = vsel %vm379_vm0, %v43_v17, %v59_v33  ;;  %v167_v33 = vmul.f32 %v319_v10, %v377_v27 }
  0x86   :  { %v93_v36 = vmul.f32 %v386_v29, %v77_v34  ;;  %v92_v37 = vmul.f32 %v386_v29, %v76_v35 }
  0x88   :  { %v101_v40 = vadd.f32 %v93_v36, %v85_v31  ;;  %v100_v41 = vadd.f32 %v92_v37, %v84_v30  ;;  %v65_v42 = vpop.permute.xlu1 %64  ;;  %v63_v43 = vpop.permute.xlu0 %62 }
  0x89   :  { %v79_v44 = vsel %vm379_vm0, %v49_v19, %v65_v42  ;;  %v78_v45 = vsel %vm379_vm0, %v47_v16, %v63_v43 }
  0x8a   :  { %109 = vst [vmem:[%s518_s3 + $0x2] sm:$0x3] %v101_v40  ;;  %108 = vst [vmem:[%s518_s3] sm:$0x3] %v100_v41  ;;  %v95_v46 = vmul.f32 %v386_v29, %v79_v44  ;;  %v94_v47 = vmul.f32 %v386_v29, %v78_v45  ;;  %v168_v40 = vmul.f32 %v338_v13, %v377_v27 }
  0x8c   :  { %v103_v50 = vadd.f32 %v95_v46, %v87_v39  ;;  %v102_v51 = vadd.f32 %v94_v47, %v86_v38  ;;  %v69_v52 = vpop.permute.xlu1 %68  ;;  %v67_v53 = vpop.permute.xlu0 %66  ;;  %v169_v39 = vmul.f32 %v333_v12, %v377_v27  ;;  %v171_v47 = vmul.f32 %v347_v14, %v377_v27 }
  0x8d   :  { %v81_v54 = vsel %vm379_vm0, %v53_v22, %v69_v52  ;;  %v80_v55 = vsel %vm379_vm0, %v51_v23, %v67_v53  ;;  %v165_v22 = vmul.f32 %v305_v8, %v377_v27  ;;  %v164_v23 = vmul.f32 %v310_v9, %v377_v27 }
  0x8e   :  { %111 = vst [vmem:[%s518_s3 + $0x6] sm:$0x3] %v103_v50  ;;  %110 = vst [vmem:[%s518_s3 + $0x4] sm:$0x3] %v102_v51  ;;  %v97_v56 = vmul.f32 %v386_v29, %v81_v54  ;;  %v96_v57 = vmul.f32 %v386_v29, %v80_v55  ;;  %v166_v8 = vmul.f32 %v324_v11, %v377_v27 }
  0x90   :  { %v105_v60 = vadd.f32 %v97_v56, %v89_v48  ;;  %v104_v61 = vadd.f32 %v96_v57, %v88_v49  ;;  %v73_v62 = vpop.permute.xlu1 %72  ;;  %v71_v63 = vpop.permute.xlu0 %70  ;;  %v170_v48 = vmul.f32 %v352_v15, %v377_v27 }
  0x91   :  { %v83_v0 = vsel %vm379_vm0, %v57_v25, %v73_v62  ;;  %v82_v1 = vsel %vm379_vm0, %v55_v26, %v71_v63 }
  0x92   :  { %113 = vst [vmem:[%s518_s3 + $0xa] sm:$0x3] %v105_v60  ;;  %112 = vst [vmem:[%s518_s3 + $0x8] sm:$0x3] %v104_v61  ;;  %v99_v2 = vmul.f32 %v386_v29, %v83_v0  ;;  %v98_v3 = vmul.f32 %v386_v29, %v82_v1 }
  0x94   :  { %v107_v4 = vadd.f32 %v99_v2, %v91_v58  ;;  %v106_v5 = vadd.f32 %v98_v3, %v90_v59  ;;  %v127_v6 = vpop.permute.xlu1 %126  ;;  %v125_v7 = vpop.permute.xlu0 %124 }
  0x96   :  { %115 = vst [vmem:[%s518_s3 + $0xe] sm:$0x3] %v107_v4  ;;  %114 = vst [vmem:[%s518_s3 + $0xc] sm:$0x3] %v106_v5 }
  0x98   :  { %v131_v16 = vpop.permute.xlu1 %130  ;;  %v129_v17 = vpop.permute.xlu0 %128 }
  0x9c   :  { %v135_v18 = vpop.permute.xlu1 %134  ;;  %v133_v19 = vpop.permute.xlu0 %132 }
  0xa0   :  { %v139_v20 = vpop.permute.xlu1 %138  ;;  %v137_v21 = vpop.permute.xlu0 %136 }
  0xa4   :  { %v143_v24 = vpop.permute.xlu1 %142  ;;  %v141_v25 = vpop.permute.xlu0 %140 }
  0xa5   :  { %v157_v26 = vsel %vm379_vm0, %v127_v6, %v143_v24  ;;  %v156_v30 = vsel %vm379_vm0, %v125_v7, %v141_v25 }
  0xa6   :  { %v173_v31 = vmul.f32 %v386_v29, %v157_v26  ;;  %v172_v32 = vmul.f32 %v386_v29, %v156_v30 }
  0xa8   :  { %v181_v34 = vadd.f32 %v173_v31, %v165_v22  ;;  %v180_v9 = vadd.f32 %v172_v32, %v164_v23  ;;  %v147_v35 = vpop.permute.xlu1 %146  ;;  %v145_v36 = vpop.permute.xlu0 %144 }
  0xa9   :  { %v159_v37 = vsel %vm379_vm0, %v131_v16, %v147_v35  ;;  %v158_v38 = vsel %vm379_vm0, %v129_v17, %v145_v36 }
  0xaa   :  { %189 = vst [vmem:[%s519_s4 + $0x2] sm:$0x3] %v181_v34  ;;  %188 = vst [vmem:[%s519_s4] sm:$0x3] %v180_v9  ;;  %v175_v10 = vmul.f32 %v386_v29, %v159_v37  ;;  %v174_v11 = vmul.f32 %v386_v29, %v158_v38 }
  0xac   :  { %v183_v41 = vadd.f32 %v175_v10, %v167_v33  ;;  %v182_v42 = vadd.f32 %v174_v11, %v166_v8  ;;  %v151_v43 = vpop.permute.xlu1 %150  ;;  %v149_v44 = vpop.permute.xlu0 %148 }
  0xad   :  { %v161_v45 = vsel %vm379_vm0, %v135_v18, %v151_v43  ;;  %v160_v46 = vsel %vm379_vm0, %v133_v19, %v149_v44 }
  0xae   :  { %191 = vst [vmem:[%s519_s4 + $0x6] sm:$0x3] %v183_v41  ;;  %190 = vst [vmem:[%s519_s4 + $0x4] sm:$0x3] %v182_v42  ;;  %v177_v12 = vmul.f32 %v386_v29, %v161_v45  ;;  %v176_v13 = vmul.f32 %v386_v29, %v160_v46 }
  0xb0   :  { %v185_v49 = vadd.f32 %v177_v12, %v169_v39  ;;  %v184_v50 = vadd.f32 %v176_v13, %v168_v40  ;;  %v155_v51 = vpop.permute.xlu1 %154  ;;  %v153_v52 = vpop.permute.xlu0 %152 }
  0xb1   :  { %v163_v53 = vsel %vm379_vm0, %v139_v20, %v155_v51  ;;  %v162_v54 = vsel %vm379_vm0, %v137_v21, %v153_v52 }
  0xb2   :  { %193 = vst [vmem:[%s519_s4 + $0xa] sm:$0x3] %v185_v49  ;;  %192 = vst [vmem:[%s519_s4 + $0x8] sm:$0x3] %v184_v50  ;;  %v179_v14 = vmul.f32 %v386_v29, %v163_v53  ;;  %v178_v15 = vmul.f32 %v386_v29, %v162_v54 }
  0xb4   :  { %v187_v27 = vadd.f32 %v179_v14, %v171_v47  ;;  %v186_v55 = vadd.f32 %v178_v15, %v170_v48 }
  0xb6   :  { %195 = vst [vmem:[%s519_s4 + $0xe] sm:$0x3] %v187_v27  ;;  %194 = vst [vmem:[%s519_s4 + $0xc] sm:$0x3] %v186_v55 }

</bundles_post_ra>
